<compile_context>
chip_gen: v6e
topology: v6e:2x2x1
jax: 0.10.0
libtpu: 0.0.40
codegen_flags: <defaults>
</compile_context>

<pallas_src>
import jax
import jax.numpy as jnp
from jax.experimental import pallas as pl
from jax.experimental.pallas import tpu as pltpu

LANE = 128     # vreg lane width
SUBLANE = 8    # vreg sublane count


def _round_up(x, m):
    return (x + m - 1) // m * m


def _cdiv(a, b):
    return -(-a // b)


# ---------------------------------------------------------------------------
# Kernel
# ---------------------------------------------------------------------------
def critic_kernel(x_ref, w1_ref, b1_ref, w2_ref, b2_ref, w3_ref, b3_ref, out_ref):
    """Fused critic MLP on one batch tile: relu(x@W1+b1) -> relu(@W2+b2) -> value head."""
    x = x_ref[...]                       # (TB, S)

    # fc1 + ReLU (MXU, bf16 or f32 operands, f32 accumulate)
    h1 = jnp.dot(x.astype(w1_ref.dtype), w1_ref[...],
                 preferred_element_type=jnp.float32)
    h1 = jnp.maximum(h1 + b1_ref[...], 0.0)

    # fc2 + ReLU
    h2 = jnp.dot(h1.astype(w2_ref.dtype), w2_ref[...],
                 preferred_element_type=jnp.float32)
    h2 = jnp.maximum(h2 + b2_ref[...], 0.0)

    # fc3: output width is 1, so an MXU pass would waste 127/128 columns and pay the
    # MRF drain.  Do it as a VPU multiply + cross-lane (XLU) reduction instead.
    # w3_ref is a lane-dense (1, H2_pad) f32 row; b3 is an SMEM scalar.
    v = jnp.sum(h2 * w3_ref[...], axis=-1, keepdims=True) + b3_ref[0, 0]

    out_ref[...] = v.astype(out_ref.dtype)


# ---------------------------------------------------------------------------
# One-time parameter preparation (padding hoisted out of the forward path)
# ---------------------------------------------------------------------------
def pad_critic_params(w1, b1, w2, b2, w3, b3, *, mxu_dtype=jnp.bfloat16):
    """Pad hidden dims to the 128-lane width ONCE; store MXU weights in `mxu_dtype`.

    Zero padding is numerically exact: padded h1/h2 columns stay 0 through ReLU and
    their value-head weights are 0.  The contraction dim of fc1 (state_size) is left
    unpadded — the activation is fed at its native width.
    """
    S, H1 = w1.shape
    H2 = w2.shape[1]
    H1p = _round_up(H1, LANE)
    H2p = _round_up(H2, LANE)
    f32 = jnp.float32

    w1_p = jnp.zeros((S, H1p), mxu_dtype).at[:, :H1].set(w1.astype(mxu_dtype))
    b1_p = jnp.zeros((1, H1p), f32).at[:, :H1].set(jnp.reshape(b1, (1, H1)).astype(f32))
    w2_p = jnp.zeros((H1p, H2p), mxu_dtype).at[:H1, :H2].set(w2.astype(mxu_dtype))
    b2_p = jnp.zeros((1, H2p), f32).at[:, :H2].set(jnp.reshape(b2, (1, H2)).astype(f32))
    # value-head weights as a lane-dense (1, H2_pad) f32 row for the in-kernel reduce
    w3_row = jnp.zeros((1, H2p), f32).at[:, :H2].set(jnp.reshape(w3, (1, H2)).astype(f32))
    b3_p = jnp.reshape(b3, (1, 1)).astype(f32)
    return w1_p, b1_p, w2_p, b2_p, w3_row, b3_p


# ---------------------------------------------------------------------------
# Forward pass (single Pallas call)
# ---------------------------------------------------------------------------
def critic_forward(state, padded_params, *, block_batch=2048):
    """Run the fused critic MLP as a single batch-tiled Pallas TPU kernel.

    state:         (B, state_size)       — fed unpadded (only batch rows are padded)
    padded_params: output of pad_critic_params
    returns        (B, 1) f32  == V(s)
    """
    w1_p, b1_p, w2_p, b2_p, w3_row, b3_p = padded_params
    B, S = state.shape
    assert w1_p.shape[0] == S, "state_size must match padded fc1 weights"
    H1p = w1_p.shape[1]
    H2p = w2_p.shape[1]

    # Adaptive batch tile:
    #  * capped at block_batch rows (VMEM is ample: a 2048x48 f32 tile double-buffered
    #    is <1 MiB vs the 32 MiB scoped default / 64 MiB on v7x),
    #  * at least 2 tiles when B >= 512 so the "parallel" axis can shard across both
    #    TensorCores on v7x,
    #  * sized as round_up(cdiv(B, num_tiles), 8) to avoid up-to-2x padding waste for
    #    batches just above a tile multiple.
    target_tiles = max(_cdiv(B, block_batch), 2 if B >= 512 else 1)
    TB = _round_up(_cdiv(B, target_tiles), SUBLANE)
    num_tiles = _cdiv(B, TB)
    B_pad = num_tiles * TB

    x = state if B_pad == B else jnp.pad(state, ((0, B_pad - B), (0, 0)))

    f32 = jnp.float32
    const2 = lambda i: (0, 0)  # weights/biases: same block every step -> VMEM-resident

    flops = 2 * B_pad * (S * H1p + H1p * H2p + H2p)
    bytes_accessed = (B_pad * S * x.dtype.itemsize
                      + S * H1p * w1_p.dtype.itemsize
                      + H1p * H2p * w2_p.dtype.itemsize
                      + 4 * (H1p + H2p + H2p + 1 + B_pad))

    out = pl.pallas_call(
        critic_kernel,
        out_shape=jax.ShapeDtypeStruct((B_pad, 1), f32),
        grid=(num_tiles,),
        in_specs=[
            pl.BlockSpec((TB, S), lambda i: (i, 0)),      # batch-tiled, unpadded lanes
            pl.BlockSpec((S, H1p), const2),
            pl.BlockSpec((1, H1p), const2),
            pl.BlockSpec((H1p, H2p), const2),
            pl.BlockSpec((1, H2p), const2),
            pl.BlockSpec((1, H2p), const2),
            pl.BlockSpec(memory_space=pltpu.MemorySpace.SMEM),   # b3 scalar in SMEM
        ],
        out_specs=pl.BlockSpec((TB, 1), lambda i: (i, 0)),
        compiler_params=pltpu.CompilerParams(
            dimension_semantics=("parallel",)),           # megacore sharding on v7x
        cost_estimate=pl.CostEstimate(
            flops=flops, transcendentals=0, bytes_accessed=bytes_accessed),
    )(x, w1_p, b1_p, w2_p, b2_p, w3_row, b3_p)

    return out[:B]


# ---------------------------------------------------------------------------
# Parameter init (mirrors layer_init: orthogonal weights, zero biases)
# ---------------------------------------------------------------------------
def orthogonal_init(key, shape, scale=1.0, dtype=jnp.float32):
    """Deterministic orthogonal init (mimics nn.init.orthogonal_)."""
    n_rows, n_cols = shape
    big = max(n_rows, n_cols)
    a = jax.random.normal(key, (big, big), dtype=jnp.float32)
    q, r = jnp.linalg.qr(a)
    q = q * jnp.sign(jnp.diag(r))
    return (scale * q[:n_rows, :n_cols]).astype(dtype)


def make_critic_params(key, state_size, hidden_sizes_critic):
    """fc1/fc2/fc3 params with orthogonal weights (stored as (in, out)) and zero biases."""
    h1, h2 = hidden_sizes_critic
    k1, k2, k3 = jax.random.split(key, 3)
    w1 = orthogonal_init(k1, (state_size, h1))
    w2 = orthogonal_init(k2, (h1, h2))
    w3 = orthogonal_init(k3, (h2, 1))
    b1 = jnp.zeros((h1,), jnp.float32)
    b2 = jnp.zeros((h2,), jnp.float32)
    b3 = jnp.zeros((1,), jnp.float32)
    return w1, b1, w2, b2, w3, b3


if __name__ == "__main__":
    # Centralized critic: state is the concatenation of all agents' observations.
    batch = 8
    state_size = 48                 # e.g. 4 agents x 12-dim observation
    hidden_sizes_critic = (64, 64)  # params.hidden_sizes_critic

    key = jax.random.PRNGKey(0)
    k_state, k_params = jax.random.split(key)

    state = jax.random.normal(k_state, (batch, state_size), dtype=jnp.float32)
    w1, b1, w2, b2, w3, b3 = make_critic_params(k_params, state_size, hidden_sizes_critic)

    # Padding / dtype conversion done ONCE (not per forward call).
    padded_f32 = pad_critic_params(w1, b1, w2, b2, w3, b3, mxu_dtype=jnp.float32)
    padded_bf16 = pad_critic_params(w1, b1, w2, b2, w3, b3, mxu_dtype=jnp.bfloat16)

    critic = jax.jit(critic_forward)

    # --- exact f32 path vs. plain-JAX reference (same math as the PyTorch forward) ---
    v_f32 = jax.block_until_ready(critic(state, padded_f32))
    h = jnp.maximum(state @ w1 + b1, 0.0)
    h = jnp.maximum(h @ w2 + b2, 0.0)
    v_ref = h @ w3 + b3
    assert v_f32.shape == (batch, 1)
    assert jnp.allclose(v_f32, v_ref, atol=1e-5, rtol=1e-5), "f32 kernel mismatch"

    # --- default bf16-MXU path (f32 accumulation) vs. matching bf16-operand reference ---
    v_bf16 = jax.block_until_ready(critic(state, padded_bf16))
    bf16 = jnp.bfloat16
    hb = jnp.maximum(jnp.dot(state.astype(bf16), w1.astype(bf16),
                             preferred_element_type=jnp.float32) + b1, 0.0)
    hb = jnp.maximum(jnp.dot(hb.astype(bf16), w2.astype(bf16),
                             preferred_element_type=jnp.float32) + b2, 0.0)
    v_ref_bf16 = hb @ w3 + b3
    assert v_bf16.shape == (batch, 1)
    assert jnp.allclose(v_bf16, v_ref_bf16, atol=1e-2, rtol=1e-2), "bf16 kernel mismatch"
    assert jnp.allclose(v_bf16, v_ref, atol=5e-2, rtol=5e-2), "bf16 kernel far from f32 ref"

    print("KERNEL_OK")
</pallas_src>

<mosaic_0001>
module attributes {stable_mosaic.version = 11 : i64} {
  func.func @critic_kernel(%arg0: i32, %arg1: memref<8x48xf32, #tpu.memory_space<vmem>>, %arg2: memref<48x128xf32, #tpu.memory_space<vmem>>, %arg3: memref<1x128xf32, #tpu.memory_space<vmem>>, %arg4: memref<128x128xf32, #tpu.memory_space<vmem>>, %arg5: memref<1x128xf32, #tpu.memory_space<vmem>>, %arg6: memref<1x128xf32, #tpu.memory_space<vmem>>, %arg7: memref<1x1xf32, #tpu.memory_space<smem>>, %arg8: memref<8x1xf32, #tpu.memory_space<vmem>>) attributes {dimension_semantics = [#tpu.dimension_semantics<parallel>], iteration_bounds = array<i64: 1>, scalar_prefetch = 0 : i64, scratch_operands = 0 : i64, tpu.core_type = #tpu.core_type<tc>, window_params = [{transform_indices = @transform_0, window_bounds = array<i64: 8, 48>}, {pipeline_mode = #tpu.pipeline_mode<synchronous>, transform_indices = @transform_1, window_bounds = array<i64: 48, 128>}, {pipeline_mode = #tpu.pipeline_mode<synchronous>, transform_indices = @transform_2, window_bounds = array<i64: 1, 128>}, {pipeline_mode = #tpu.pipeline_mode<synchronous>, transform_indices = @transform_3, window_bounds = array<i64: 128, 128>}, {pipeline_mode = #tpu.pipeline_mode<synchronous>, transform_indices = @transform_4, window_bounds = array<i64: 1, 128>}, {pipeline_mode = #tpu.pipeline_mode<synchronous>, transform_indices = @transform_5, window_bounds = array<i64: 1, 128>}, {transform_indices = @transform_6, window_bounds = array<i64: 1, 1>}, {transform_indices = @transform_7, window_bounds = array<i64: 8, 1>}]} {
    %c0 = arith.constant 0 : index
    %c0_0 = arith.constant 0 : index
    %0 = vector.load %arg1[%c0, %c0_0] : memref<8x48xf32, #tpu.memory_space<vmem>>, vector<8x48xf32>
    %c0_1 = arith.constant 0 : index
    %c0_2 = arith.constant 0 : index
    %1 = vector.load %arg2[%c0_1, %c0_2] : memref<48x128xf32, #tpu.memory_space<vmem>>, vector<48x128xf32>
    %cst = arith.constant dense<0.000000e+00> : vector<8x128xf32>
    %2 = tpu.matmul %0, %1, %cst {dimension_numbers = #tpu.dot_dimension_numbers<[1], [0], [0], [1], [0, 0, 1, 1], [], []>} : vector<8x48xf32>, vector<48x128xf32>, vector<8x128xf32> -> vector<8x128xf32>
    %c0_3 = arith.constant 0 : index
    %c0_4 = arith.constant 0 : index
    %3 = vector.load %arg3[%c0_3, %c0_4] : memref<1x128xf32, #tpu.memory_space<vmem>>, vector<1x128xf32>
    %4 = vector.broadcast %3 : vector<1x128xf32> to vector<8x128xf32>
    %5 = arith.addf %2, %4 : vector<8x128xf32>
    %cst_5 = arith.constant 0.000000e+00 : f32
    %6 = vector.broadcast %cst_5 : f32 to vector<8x128xf32>
    %7 = arith.maximumf %5, %6 : vector<8x128xf32>
    %c0_6 = arith.constant 0 : index
    %c0_7 = arith.constant 0 : index
    %8 = vector.load %arg4[%c0_6, %c0_7] : memref<128x128xf32, #tpu.memory_space<vmem>>, vector<128x128xf32>
    %cst_8 = arith.constant dense<0.000000e+00> : vector<8x128xf32>
    %9 = tpu.matmul %7, %8, %cst_8 {dimension_numbers = #tpu.dot_dimension_numbers<[1], [0], [0], [1], [0, 0, 1, 1], [], []>} : vector<8x128xf32>, vector<128x128xf32>, vector<8x128xf32> -> vector<8x128xf32>
    %c0_9 = arith.constant 0 : index
    %c0_10 = arith.constant 0 : index
    %10 = vector.load %arg5[%c0_9, %c0_10] : memref<1x128xf32, #tpu.memory_space<vmem>>, vector<1x128xf32>
    %11 = vector.broadcast %10 : vector<1x128xf32> to vector<8x128xf32>
    %12 = arith.addf %9, %11 : vector<8x128xf32>
    %cst_11 = arith.constant 0.000000e+00 : f32
    %13 = vector.broadcast %cst_11 : f32 to vector<8x128xf32>
    %14 = arith.maximumf %12, %13 : vector<8x128xf32>
    %c0_12 = arith.constant 0 : index
    %c0_13 = arith.constant 0 : index
    %15 = vector.load %arg6[%c0_12, %c0_13] : memref<1x128xf32, #tpu.memory_space<vmem>>, vector<1x128xf32>
    %16 = vector.broadcast %15 : vector<1x128xf32> to vector<8x128xf32>
    %17 = arith.mulf %14, %16 : vector<8x128xf32>
    %cst_14 = arith.constant dense<0.000000e+00> : vector<8xf32>
    %18 = vector.multi_reduction <add>, %17, %cst_14 [1] : vector<8x128xf32> to vector<8xf32>
    %19 = vector.shape_cast %18 : vector<8xf32> to vector<8x1xf32>
    %c0_15 = arith.constant 0 : index
    %c0_16 = arith.constant 0 : index
    %20 = memref.load %arg7[%c0_15, %c0_16] : memref<1x1xf32, #tpu.memory_space<smem>>
    %21 = vector.broadcast %20 : f32 to vector<8x1xf32>
    %22 = arith.addf %19, %21 : vector<8x1xf32>
    %c0_17 = arith.constant 0 : index
    %c0_18 = arith.constant 0 : index
    %23 = vector.load %arg8[%c0_17, %c0_18] : memref<8x1xf32, #tpu.memory_space<vmem>>, vector<8x1xf32>
    tpu.vector_store %arg8[%c0_17, %c0_18], %22 {strides = array<i32>} : memref<8x1xf32, #tpu.memory_space<vmem>>, vector<8x1xf32>,
    return
  }
  func.func @transform_0(%arg0: i32) -> (i32, i32) {
    %c0_i32 = arith.constant 0 : i32
    %c0_i32_0 = arith.constant 0 : i32
    return %arg0, %c0_i32 : i32, i32
  }
  func.func @transform_1(%arg0: i32) -> (i32, i32) {
    %c0_i32 = arith.constant 0 : i32
    %c0_i32_0 = arith.constant 0 : i32
    %c0_i32_1 = arith.constant 0 : i32
    return %c0_i32, %c0_i32_0 : i32, i32
  }
  func.func @transform_2(%arg0: i32) -> (i32, i32) {
    %c0_i32 = arith.constant 0 : i32
    %c0_i32_0 = arith.constant 0 : i32
    %c0_i32_1 = arith.constant 0 : i32
    return %c0_i32, %c0_i32_0 : i32, i32
  }
  func.func @transform_3(%arg0: i32) -> (i32, i32) {
    %c0_i32 = arith.constant 0 : i32
    %c0_i32_0 = arith.constant 0 : i32
    %c0_i32_1 = arith.constant 0 : i32
    return %c0_i32, %c0_i32_0 : i32, i32
  }
  func.func @transform_4(%arg0: i32) -> (i32, i32) {
    %c0_i32 = arith.constant 0 : i32
    %c0_i32_0 = arith.constant 0 : i32
    %c0_i32_1 = arith.constant 0 : i32
    return %c0_i32, %c0_i32_0 : i32, i32
  }
  func.func @transform_5(%arg0: i32) -> (i32, i32) {
    %c0_i32 = arith.constant 0 : i32
    %c0_i32_0 = arith.constant 0 : i32
    %c0_i32_1 = arith.constant 0 : i32
    return %c0_i32, %c0_i32_0 : i32, i32
  }
  func.func @transform_6(%arg0: i32) -> (i32, i32) {
    %c0_i32 = arith.constant 0 : i32
    %c0_i32_0 = arith.constant 0 : i32
    %c0_i32_1 = arith.constant 0 : i32
    return %c0_i32, %c0_i32_0 : i32, i32
  }
  func.func @transform_7(%arg0: i32) -> (i32, i32) {
    %c0_i32 = arith.constant 0 : i32
    %c0_i32_0 = arith.constant 0 : i32
    return %arg0, %c0_i32 : i32, i32
  }
}

</mosaic_0001>

<bundles_post_ra>
// kernel: critic_forward.1
= control target key start
LH: loop header
LB: loop body
LE: loop exit
PB: predicated region body
PF: predicated region fallthrough
CT: control target
= control target key end

     0   :  { %13 = vsyncpa [#allocation4], 0  ;;  %s514_s0 = inlined_call_operand.hbm [shape: f32[8,48], index: 0, kind: input, shape index: {}]   ;;  %s515_s1 = inlined_call_operand.hbm [shape: f32[48,128], index: 1, kind: input, shape index: {}]   ;;  %s516_s2 = inlined_call_operand.vmem [shape: f32[1,128], index: 2, kind: input, shape index: {}]   ;;  %s517_s3 = inlined_call_operand.hbm [shape: f32[128,128], index: 3, kind: input, shape index: {}]   ;;  %s518_s4 = inlined_call_operand.vmem [shape: f32[1,128], index: 4, kind: input, shape index: {}]   ;;  %s519_s5 = inlined_call_operand.vmem [shape: f32[1,128], index: 5, kind: input, shape index: {}]   ;;  %s520_s6 = inlined_call_operand.<no memory space> [shape: f32[1,1], index: 6, kind: input, shape index: {}]   ;;  %s521_s7 = inlined_call_operand.vmem [shape: f32[8,1], index: 7, kind: output, shape index: {}]  }
   0x1   :  { %14 = vsyncpa [#allocation6], 0  ;;  %s419_s24 = smov [#allocation5]  }
   0x2   :  { %s30_s25 = sshll.u32 %s419_s24, 4  ;;  %s31_s25 = int_to_ptr.vmem [resolvable:$true] %s30_s25 }
   0x3   :  { %s363_s26 = scalar_lea.vmem %s31_s25, 768  ;;  %p368_p1 = scmp.lt.s32.totalorder %s31_s25, %s31_s25 }
   0x4   :  { %p364_p0 = scmp.ne.s32.totalorder %s31_s25, %s363_s26  ;;  %p369_p2 = scmp.lt.s32.totalorder %s363_s26, %s363_s26 }
   0x6   :  { %p370_p3 = por %p369_p2, %p368_p1 }
   0x8   :  { %p371_p4 = pnand %p370_p3, %p364_p0 }
   0xa   :  { %374 = shalt.err (!%p371_p4)
}
   0xb   :  { %s420_s27 = smov 128   ;;  %s421_s28 = smov 8  }
   0xc   :  { %36 = dma.hbm_to_vmem [thread:$0]  %s515_s1, 768, %s31_s25, [#allocation6], %s420_s27, %s420_s27, %s421_s28  }
   0xd   :  { %s422_s8 = smov [#allocation3]   ;;  %s423_s10 = smov [#allocation7]  }
   0xe   :  { %s21_s9 = sshll.u32 %s422_s8, 4  ;;  %s44_s11 = sshll.u32 %s423_s10, 4  ;;  %s22_s9 = int_to_ptr.vmem [resolvable:$true] %s21_s9  ;;  %s45_s11 = int_to_ptr.vmem [resolvable:$true] %s44_s11 }
   0xf   :  { %s383_s12 = scalar_lea.vmem %s22_s9, 128  ;;  %p388_p6 = scmp.lt.s32.totalorder %s22_s9, %s22_s9 }
  0x10   :  { %p384_p5 = scmp.ne.s32.totalorder %s22_s9, %s383_s12  ;;  %p389_p7 = scmp.lt.s32.totalorder %s383_s12, %s383_s12 }
  0x12   :  { %p390_p8 = por %p389_p7, %p388_p6 }
  0x14   :  { %p391_p9 = pnand %p390_p8, %p384_p5 }
  0x16   :  { %394 = shalt.err (!%p391_p9)
}
  0x17   :  { %24 = dma.hbm_to_vmem [thread:$0]  %s514_s0, 128, %s22_s9, [#allocation4]  }
  0x18   :  { %s403_s15 = scalar_lea.vmem %s45_s11, 2048  ;;  %p408_p11 = scmp.lt.s32.totalorder %s45_s11, %s45_s11 }
  0x19   :  { %p404_p10 = scmp.ne.s32.totalorder %s45_s11, %s403_s15  ;;  %p409_p12 = scmp.lt.s32.totalorder %s403_s15, %s403_s15 }
  0x1b   :  { %p410_p13 = por %p409_p12, %p408_p11 }
  0x1d   :  { %p411_p0 = pnand %p410_p13, %p404_p10 }
  0x1f   :  { %414 = shalt.err (!%p411_p0)
}
  0x20   :  { %50 = dma.hbm_to_vmem [thread:$0]  %s517_s3, 2048, %s45_s11, [#allocation6], %s420_s27, %s420_s27, %s421_s28  }
  0x21   :  { %415 = dma.done.wait [#allocation4], 128  }
  0x22   :  { %416 = vsyncadd [#allocation4], 4294967168 }
  0x23   :  { %417 = dma.done.wait [#allocation6], 2816  }
  0x24   :  { %418 = vsyncadd [#allocation6], 4294964480  ;;  %v424_v0 = vmov 0.0   ;;  %vm425_vm0 = vmmov 0   ;;  %v72_v1 = vld [vmem:[#allocation5 + $0x28] sm:$0xff]  ;;  %v71_v2 = vld [vmem:[#allocation5 + $0x20] sm:$0xff]  ;;  %v260_v36 = vstv %s520_s6 }
  0x25   :  { %298 = vmatprep.subr.mxu0 %v424_v0  ;;  %310 = vmatprep.mubr.msk.f32.mxu0 %vm425_vm0, %v424_v0  ;;  %v70_v3 = vld [vmem:[#allocation5 + $0x18] sm:$0xff]  ;;  %v170_v4 = vld [vmem:[#allocation7 + $0x78] sm:$0xff]  ;;  %v169_v5 = vld [vmem:[#allocation7 + $0x70] sm:$0xff]  ;;  %vm80_vm1 = vcmask 392192   ;;  %vm262_vm2 = vcmask 7168  }
  0x26   :  { %313 = vmatprep.subr.mxu1 %v424_v0  ;;  %345 = vmatprep.mubr.msk.f32.mxu1 %vm425_vm0, %v424_v0  ;;  %v69_v6 = vld [vmem:[#allocation5 + $0x10] sm:$0xff]  ;;  %v168_v7 = vld [vmem:[#allocation7 + $0x68] sm:$0xff]  ;;  %v68_v8 = vld [vmem:[#allocation5 + $0x8] sm:$0xff] }
  0x27   :  { %299 = vmatpush3.msra.mxu0 %v72_v1  ;;  %314 = vmatpush3.msra.mxu1 %v170_v4  ;;  %v167_v9 = vld [vmem:[#allocation7 + $0x60] sm:$0xff]  ;;  %v67_v10 = vld [vmem:[#allocation5] sm:$0xff]  ;;  %v166_v11 = vld [vmem:[#allocation7 + $0x58] sm:$0xff] }
  0x28   :  { %300 = vmatprep.subr.mxu0 %v424_v0  ;;  %315 = vmatprep.subr.mxu1 %v424_v0  ;;  %v66_v12 = vld [vmem:[#allocation3] sm:$0xff]  ;;  %v165_v13 = vld [vmem:[#allocation7 + $0x50] sm:$0xff]  ;;  %v163_v15 = vld [vmem:[#allocation7 + $0x40] sm:$0xff] }
  0x29   :  { %301 = vmatpush3.msra.mxu0 %v71_v2  ;;  %316 = vmatpush3.msra.mxu1 %v169_v5  ;;  %v164_v14 = vld [vmem:[#allocation7 + $0x48] sm:$0xff]  ;;  %v162_v16 = vld [vmem:[#allocation7 + $0x38] sm:$0xff]  ;;  %v161_v17 = vld [vmem:[#allocation7 + $0x30] sm:$0xff] }
  0x2a   :  { %302 = vmatprep.subr.mxu0 %v424_v0  ;;  %317 = vmatprep.subr.mxu1 %v424_v0  ;;  %v160_v18 = vld [vmem:[#allocation7 + $0x28] sm:$0xff]  ;;  %v159_v19 = vld [vmem:[#allocation7 + $0x20] sm:$0xff]  ;;  %v158_v20 = vld [vmem:[#allocation7 + $0x18] sm:$0xff] }
  0x2b   :  { %303 = vmatpush3.msra.mxu0 %v70_v3  ;;  %318 = vmatpush3.msra.mxu1 %v168_v7  ;;  %v157_v21 = vld [vmem:[#allocation7 + $0x10] sm:$0xff]  ;;  %v156_v22 = vld [vmem:[#allocation7 + $0x8] sm:$0xff]  ;;  %v155_v23 = vld [vmem:[#allocation7] sm:$0xff] }
  0x2c   :  { %304 = vmatprep.subr.mxu0 %v424_v0  ;;  %319 = vmatprep.subr.mxu1 %v424_v0  ;;  %v270_v24 = vld [vmem:[%s516_s2] ss:$0 sm:$0xff] }
  0x2d   :  { %305 = vmatpush3.msra.mxu0 %v69_v6  ;;  %320 = vmatpush3.msra.mxu1 %v167_v9  ;;  %v272_v29 = vld [vmem:[%s518_s4] ss:$0 sm:$0xff] }
  0x2e   :  { %306 = vmatprep.subr.mxu0 %v424_v0  ;;  %321 = vmatprep.subr.mxu1 %v424_v0  ;;  %v273_v33 = vld [vmem:[%s519_s5] ss:$0 sm:$0xff] }
  0x2f   :  { %307 = vmatpush3.msra.mxu0 %v68_v8  ;;  %322 = vmatpush3.msra.mxu1 %v166_v11 }
  0x30   :  { %308 = vmatprep.subr.mxu0 %v424_v0  ;;  %323 = vmatprep.subr.mxu1 %v424_v0 }
  0x31   :  { %309 = vmatpush3.msra.mxu0 %v67_v10  ;;  %324 = vmatpush3.msra.mxu1 %v165_v13 }
  0x32   :  { %311 = vmatmul.mubr.msk.f32.vlgmr.msra.gmra.mxu0 %vm80_vm1, %v66_v12  ;;  %325 = vmatprep.subr.mxu1 %v424_v0 }
  0x33   :  { %326 = vmatpush3.msra.mxu1 %v164_v14 }
  0x34   :  { %327 = vmatprep.subr.mxu1 %v424_v0 }
  0x35   :  { %328 = vmatpush3.msra.mxu1 %v163_v15 }
  0x36   :  { %329 = vmatprep.subr.mxu1 %v424_v0 }
  0x37   :  { %330 = vmatpush3.msra.mxu1 %v162_v16 }
  0x38   :  { %331 = vmatprep.subr.mxu1 %v424_v0 }
  0x39   :  { %332 = vmatpush3.msra.mxu1 %v161_v17 }
  0x3a   :  { %333 = vmatprep.subr.mxu1 %v424_v0 }
  0x3b   :  { %334 = vmatpush3.msra.mxu1 %v160_v18 }
  0x3c   :  { %335 = vmatprep.subr.mxu1 %v424_v0 }
  0x3d   :  { %336 = vmatpush3.msra.mxu1 %v159_v19 }
  0x3e   :  { %337 = vmatprep.subr.mxu1 %v424_v0 }
  0x3f   :  { %338 = vmatpush3.msra.mxu1 %v158_v20 }
  0x40   :  { %339 = vmatprep.subr.mxu1 %v424_v0 }
  0x41   :  { %340 = vmatpush3.msra.mxu1 %v157_v21 }
  0x42   :  { %341 = vmatprep.subr.mxu1 %v424_v0 }
  0x43   :  { %342 = vmatpush3.msra.mxu1 %v156_v22 }
  0x44   :  { %343 = vmatprep.subr.mxu1 %v424_v0 }
  0x45   :  { %344 = vmatpush3.msra.mxu1 %v155_v23 }
  0xf2   :  { %v150_v25 = vpop.f32.mrf.mxu0 }
  0xf3   :  { %v151_v26 = vadd.f32 %v270_v24, %v150_v25 }
  0xf4   :  { %v312_v27 = vpop.f32.mrf.mxu0 }
  0xf5   :  { %v154_v28 = vmax.f32 %v151_v26, 0.0 }
  0xf7   :  { %346 = vmatmul.mubr.f32.vlgmr.msra.gmra.mxu1 %v154_v28 }
 0x1b7   :  { %v244_v30 = vpop.f32.mrf.mxu1 }
 0x1b8   :  { %v245_v31 = vadd.f32 %v272_v29, %v244_v30 }
 0x1b9   :  { %v347_v32 = vpop.f32.mrf.mxu1 }
 0x1ba   :  { %v248_v34 = vmax.f32 %v245_v31, 0.0 }
 0x1bc   :  { %v256_v35 = vmul.f32 %v273_v33, %v248_v34 }
 0x1be   :  { %257 = vadd.xlane.f32.xlu0 %v256_v35 }
 0x247   :  { %v258_v37 = vpop.xlane.xlu0 %257 }
 0x248   :  { %v261_v38 = vadd.f32 %v260_v36, %v258_v37 }
 0x24a   :  { %263 = vst.msk [vmem:[%s521_s7] sm:$0xff] %vm262_vm2, %v261_v38 }
 0x24b   :  { %268 = vsyncpa [#allocation4], 1 }
 0x24c   :  { %269 = vsyncpa [#allocation6], 1 }

</bundles_post_ra>
